<compile_context>
chip_gen: v7x
topology: tpu7x:2x2x1
jax: 0.10.0
libtpu: 0.0.40
codegen_flags: <defaults>
</compile_context>

<pallas_src>
import functools

import jax
import jax.numpy as jnp
import numpy as np
from jax.experimental import pallas as pl
from jax.experimental.pallas import tpu as pltpu

NUM_CLASS = 8      # config.num_class of the original module
FLOOD_B = 0.1      # config.b of the original module


def _round_up(x, m):
    return (x + m - 1) // m * m


def _tim_loss_kernel(logits_ref, labels_ref, out_ref,
                     acc_p_ref, acc_ce_ref, acc_ch_ref,
                     *, b, n_valid, approx_recip):
    i = pl.program_id(0)

    @pl.when(i == 0)
    def _init():
        acc_p_ref[...] = jnp.zeros_like(acc_p_ref)
        acc_ce_ref[...] = jnp.zeros_like(acc_ce_ref)
        acc_ch_ref[...] = jnp.zeros_like(acc_ch_ref)

    logits = logits_ref[...].astype(jnp.float32)        # (C, T) lane-dense
    labels = labels_ref[...]                             # (1, T) int32
    c, t = logits.shape

    # Mask out wrapper-side padding columns (padded rows of the original (N, C) input).
    lane_ids = jax.lax.broadcasted_iota(jnp.int32, (1, t), 1)
    valid = ((i * t + lane_ids) < n_valid).astype(jnp.float32)      # (1, T)

    # --- softmax over classes (sublane axis); single exp pass ---
    col_max = jnp.max(logits, axis=0, keepdims=True)                # (1, T)
    shifted = logits - col_max                                      # (C, T)
    e = jnp.exp(shifted)                                            # only full-tile transcendental
    sumexp = jnp.sum(e, axis=0, keepdims=True)                      # (1, T)
    lse = jnp.log(sumexp)                                           # per-row log only
    if approx_recip:
        inv_sumexp = pl.reciprocal(sumexp, approx=True)             # EUP, ~free
    else:
        inv_sumexp = 1.0 / sumexp
    probs = e * inv_sumexp                                          # (C, T)
    logp = shifted - lse                                            # VALU only (no 2nd log)

    # --- one-hot from sublane iota vs labels, masked for padding ---
    class_ids = jax.lax.broadcasted_iota(jnp.int32, (c, t), 0)
    onehot = (class_ids == labels).astype(jnp.float32) * valid      # (C, T)
    mprobs = probs * valid                                          # (C, T)

    # --- per-tile partial sums accumulated in VMEM scratch ---
    acc_p_ref[...] += jnp.sum(mprobs, axis=1, keepdims=True)        # (C, 1) class sums
    acc_ce_ref[...] += jnp.reshape(jnp.sum(onehot * logp), (1, 1))  # CE numerator
    acc_ch_ref[...] += jnp.reshape(jnp.sum(mprobs * logp), (1, 1))  # cond-ent numerator

    # --- finalize on the last grid step ---
    @pl.when(i == pl.num_programs(0) - 1)
    def _finalize():
        inv_n = jnp.float32(1.0 / n_valid)                          # static constant
        ce = -acc_ce_ref[...] * inv_n                               # (1, 1)
        loss = jnp.abs(ce - b) + b                                  # flooding
        cond_ent = -acc_ch_ref[...] * inv_n                         # (1, 1)
        mean_p = acc_p_ref[...] * inv_n                             # (C, 1)
        ent = -jnp.sum(mean_p * jnp.log2(mean_p + 1e-12),
                       axis=0, keepdims=True)                       # (1, 1)
        out_ref[...] = loss + ent - cond_ent


def tim_loss(logits, labels, *, b=FLOOD_B, tile_n=8192, approx_recip=True):
    """logits: (N, C) (any float dtype), labels: (N,) int. Returns scalar f32."""
    n, c = logits.shape
    # Lane-dense layout: classes on sublanes, rows on the 128-wide lane axis.
    logits_t = jnp.transpose(logits)                     # (C, N); dtype preserved
    labels2d = labels.astype(jnp.int32).reshape(1, n)    # (1, N) lane-dense

    tile = _round_up(min(int(tile_n), _round_up(n, 128)), 128)
    n_pad = _round_up(n, tile)
    if n_pad != n:
        logits_t = jnp.pad(logits_t, ((0, 0), (0, n_pad - n)))
        labels2d = jnp.pad(labels2d, ((0, 0), (0, n_pad - n)))
    grid = (n_pad // tile,)

    cost = pl.CostEstimate(
        flops=int(12 * n_pad * c),
        transcendentals=int(n_pad * c + n_pad + c),
        bytes_accessed=int(logits_t.size * logits_t.dtype.itemsize
                           + labels2d.size * 4 + 4),
    )

    out = pl.pallas_call(
        functools.partial(_tim_loss_kernel, b=float(b), n_valid=int(n),
                          approx_recip=bool(approx_recip)),
        out_shape=jax.ShapeDtypeStruct((1, 1), jnp.float32),
        grid=grid,
        in_specs=[
            pl.BlockSpec((c, tile), lambda i: (0, i)),
            pl.BlockSpec((1, tile), lambda i: (0, i)),
        ],
        out_specs=pl.BlockSpec((1, 1), lambda i: (0, 0)),
        scratch_shapes=[
            pltpu.VMEM((c, 1), jnp.float32),   # per-class prob sums
            pltpu.VMEM((1, 1), jnp.float32),   # sum(onehot * logp)
            pltpu.VMEM((1, 1), jnp.float32),   # sum(probs * logp)
        ],
        compiler_params=pltpu.CompilerParams(
            dimension_semantics=("arbitrary",),   # reduction over row tiles
        ),
        cost_estimate=cost,
    )(logits_t, labels2d)
    return out[0, 0]


def tim_loss_ref(logits, labels, *, b=FLOOD_B):
    """Pure-JAX reference reproducing the PyTorch semantics."""
    logits = logits.astype(jnp.float32)
    logp = jax.nn.log_softmax(logits, axis=1)
    n = logits.shape[0]
    ce = -jnp.mean(logp[jnp.arange(n), labels])
    loss = jnp.abs(ce - b) + b
    probs = jax.nn.softmax(logits, axis=1)
    mean_p = jnp.mean(probs, axis=0)
    ent = -jnp.sum(mean_p * jnp.log2(mean_p + 1e-12))
    cond = jnp.mean(-jnp.sum(probs * jnp.log(probs + 1e-12), axis=1))
    return loss + ent - cond


if __name__ == "__main__":
    key = jax.random.PRNGKey(0)
    k1, k2 = jax.random.split(key)
    batch, seq = 2, 8
    n = batch * seq                     # flattened (-1, num_class) rows
    logits = jax.random.normal(k1, (n, NUM_CLASS), dtype=jnp.float32)
    labels = jax.random.randint(k2, (n,), 0, NUM_CLASS, dtype=jnp.int32)

    ref = jax.block_until_ready(tim_loss_ref(logits, labels))

    # Fast path: approx reciprocal (EUP vrcp) has ~1e-4 relative error on the
    # probability-dependent terms, so compare at a few e-3.
    out = jax.block_until_ready(tim_loss(logits, labels, approx_recip=True))
    assert np.allclose(np.asarray(out), np.asarray(ref), rtol=5e-3, atol=5e-3), (out, ref)

    # Exact-reciprocal path matches the reference tightly.
    out_exact = jax.block_until_ready(tim_loss(logits, labels, approx_recip=False))
    assert np.allclose(np.asarray(out_exact), np.asarray(ref), rtol=1e-5, atol=1e-5), (
        out_exact, ref)

    print("KERNEL_OK")
</pallas_src>

<mosaic_0001>
module attributes {stable_mosaic.version = 11 : i64} {
  func.func @_tim_loss_kernel(%arg0: i32, %arg1: memref<8x128xf32, #tpu.memory_space<vmem>>, %arg2: memref<1x128xi32, #tpu.memory_space<vmem>>, %arg3: memref<1x1xf32, #tpu.memory_space<vmem>>, %arg4: memref<8x1xf32, #tpu.memory_space<vmem>>, %arg5: memref<1x1xf32, #tpu.memory_space<vmem>>, %arg6: memref<1x1xf32, #tpu.memory_space<vmem>>) attributes {dimension_semantics = [#tpu.dimension_semantics<arbitrary>], iteration_bounds = array<i64: 1>, scalar_prefetch = 0 : i64, scratch_operands = 3 : i64, tpu.core_type = #tpu.core_type<tc>, window_params = [{transform_indices = @transform_0, window_bounds = array<i64: 8, 128>}, {transform_indices = @transform_1, window_bounds = array<i64: 1, 128>}, {pipeline_mode = #tpu.pipeline_mode<synchronous>, transform_indices = @transform_2, window_bounds = array<i64: 1, 1>}]} {
    %c0_i32 = arith.constant 0 : i32
    %0 = arith.cmpi eq, %arg0, %c0_i32 : i32
    %1 = arith.extui %0 : i1 to i32
    %c0_i32_0 = arith.constant 0 : i32
    %2 = arith.cmpi ne, %1, %c0_i32_0 : i32
    scf.if %2 {
      %cst_22 = arith.constant 0.000000e+00 : f32
      %61 = vector.broadcast %cst_22 : f32 to vector<8x1xf32>
      %c0_23 = arith.constant 0 : index
      %c0_24 = arith.constant 0 : index
      %62 = vector.load %arg4[%c0_23, %c0_24] : memref<8x1xf32, #tpu.memory_space<vmem>>, vector<8x1xf32>
      tpu.vector_store %arg4[%c0_23, %c0_24], %61 {strides = array<i32>} : memref<8x1xf32, #tpu.memory_space<vmem>>, vector<8x1xf32>,
      %cst_25 = arith.constant 0.000000e+00 : f32
      %63 = vector.broadcast %cst_25 : f32 to vector<1x1xf32>
      %c0_26 = arith.constant 0 : index
      %c0_27 = arith.constant 0 : index
      %64 = vector.load %arg5[%c0_26, %c0_27] : memref<1x1xf32, #tpu.memory_space<vmem>>, vector<1x1xf32>
      tpu.vector_store %arg5[%c0_26, %c0_27], %63 {strides = array<i32>} : memref<1x1xf32, #tpu.memory_space<vmem>>, vector<1x1xf32>,
      %cst_28 = arith.constant 0.000000e+00 : f32
      %65 = vector.broadcast %cst_28 : f32 to vector<1x1xf32>
      %c0_29 = arith.constant 0 : index
      %c0_30 = arith.constant 0 : index
      %66 = vector.load %arg6[%c0_29, %c0_30] : memref<1x1xf32, #tpu.memory_space<vmem>>, vector<1x1xf32>
      tpu.vector_store %arg6[%c0_29, %c0_30], %65 {strides = array<i32>} : memref<1x1xf32, #tpu.memory_space<vmem>>, vector<1x1xf32>,
    } else {
    }
    %c0 = arith.constant 0 : index
    %c0_1 = arith.constant 0 : index
    %3 = vector.load %arg1[%c0, %c0_1] : memref<8x128xf32, #tpu.memory_space<vmem>>, vector<8x128xf32>
    %c0_2 = arith.constant 0 : index
    %c0_3 = arith.constant 0 : index
    %4 = vector.load %arg2[%c0_2, %c0_3] : memref<1x128xi32, #tpu.memory_space<vmem>>, vector<1x128xi32>
    %5 = tpu.iota {dimensions = array<i32: 1>} : vector<1x128xi32>
    %c128_i32 = arith.constant 128 : i32
    %6 = arith.muli %arg0, %c128_i32 : i32
    %7 = vector.broadcast %6 : i32 to vector<1x128xi32>
    %8 = arith.addi %7, %5 : vector<1x128xi32>
    %c16_i32 = arith.constant 16 : i32
    %9 = vector.broadcast %c16_i32 : i32 to vector<1x128xi32>
    %10 = arith.cmpi slt, %8, %9 : vector<1x128xi32>
    %11 = arith.extui %10 : vector<1x128xi1> to vector<1x128xi32>
    %12 = arith.sitofp %11 : vector<1x128xi32> to vector<1x128xf32>
    %cst = arith.constant dense<0xFF800000> : vector<128xf32>
    %13 = vector.multi_reduction <maximumf>, %3, %cst [0] : vector<8x128xf32> to vector<128xf32>
    %14 = vector.shape_cast %13 : vector<128xf32> to vector<1x128xf32>
    %15 = vector.broadcast %14 : vector<1x128xf32> to vector<8x128xf32>
    %16 = arith.subf %3, %15 : vector<8x128xf32>
    %17 = math.exp %16 : vector<8x128xf32>
    %cst_4 = arith.constant dense<0.000000e+00> : vector<128xf32>
    %18 = vector.multi_reduction <add>, %17, %cst_4 [0] : vector<8x128xf32> to vector<128xf32>
    %19 = vector.shape_cast %18 : vector<128xf32> to vector<1x128xf32>
    %20 = math.log %19 : vector<1x128xf32>
    %21 = tpu.reciprocal %19 {approx = true} : vector<1x128xf32> -> vector<1x128xf32>
    %22 = vector.broadcast %21 : vector<1x128xf32> to vector<8x128xf32>
    %23 = arith.mulf %17, %22 : vector<8x128xf32>
    %24 = vector.broadcast %20 : vector<1x128xf32> to vector<8x128xf32>
    %25 = arith.subf %16, %24 : vector<8x128xf32>
    %26 = tpu.iota {dimensions = array<i32: 0>} : vector<8x128xi32>
    %27 = vector.broadcast %4 : vector<1x128xi32> to vector<8x128xi32>
    %28 = arith.cmpi eq, %26, %27 : vector<8x128xi32>
    %29 = arith.extui %28 : vector<8x128xi1> to vector<8x128xi32>
    %30 = arith.sitofp %29 : vector<8x128xi32> to vector<8x128xf32>
    %31 = vector.broadcast %12 : vector<1x128xf32> to vector<8x128xf32>
    %32 = arith.mulf %30, %31 : vector<8x128xf32>
    %33 = vector.broadcast %12 : vector<1x128xf32> to vector<8x128xf32>
    %34 = arith.mulf %23, %33 : vector<8x128xf32>
    %c0_5 = arith.constant 0 : index
    %c0_6 = arith.constant 0 : index
    %35 = vector.load %arg4[%c0_5, %c0_6] : memref<8x1xf32, #tpu.memory_space<vmem>>, vector<8x1xf32>
    %cst_7 = arith.constant dense<0.000000e+00> : vector<8xf32>
    %36 = vector.multi_reduction <add>, %34, %cst_7 [1] : vector<8x128xf32> to vector<8xf32>
    %37 = vector.shape_cast %36 : vector<8xf32> to vector<8x1xf32>
    %38 = arith.addf %35, %37 : vector<8x1xf32>
    %c0_8 = arith.constant 0 : index
    %c0_9 = arith.constant 0 : index
    %39 = vector.load %arg4[%c0_8, %c0_9] : memref<8x1xf32, #tpu.memory_space<vmem>>, vector<8x1xf32>
    tpu.vector_store %arg4[%c0_8, %c0_9], %38 {strides = array<i32>} : memref<8x1xf32, #tpu.memory_space<vmem>>, vector<8x1xf32>,
    %c0_10 = arith.constant 0 : index
    %c0_11 = arith.constant 0 : index
    %40 = vector.load %arg5[%c0_10, %c0_11] : memref<1x1xf32, #tpu.memory_space<vmem>>, vector<1x1xf32>
    %41 = arith.mulf %32, %25 : vector<8x128xf32>
    %42 = vector.shape_cast %41 : vector<8x128xf32> to vector<1x8x128xf32>
    %cst_12 = arith.constant dense<0.000000e+00> : vector<1xf32>
    %43 = vector.multi_reduction <add>, %42, %cst_12 [1, 2] : vector<1x8x128xf32> to vector<1xf32>
    %44 = vector.shape_cast %43 : vector<1xf32> to vector<1x1x1xf32>
    %45 = vector.extract %44[0, 0, 0] : f32 from vector<1x1x1xf32>
    %46 = vector.broadcast %45 : f32 to vector<1x1xf32>
    %47 = arith.addf %40, %46 : vector<1x1xf32>
    %c0_13 = arith.constant 0 : index
    %c0_14 = arith.constant 0 : index
    %48 = vector.load %arg5[%c0_13, %c0_14] : memref<1x1xf32, #tpu.memory_space<vmem>>, vector<1x1xf32>
    tpu.vector_store %arg5[%c0_13, %c0_14], %47 {strides = array<i32>} : memref<1x1xf32, #tpu.memory_space<vmem>>, vector<1x1xf32>,
    %c0_15 = arith.constant 0 : index
    %c0_16 = arith.constant 0 : index
    %49 = vector.load %arg6[%c0_15, %c0_16] : memref<1x1xf32, #tpu.memory_space<vmem>>, vector<1x1xf32>
    %50 = arith.mulf %34, %25 : vector<8x128xf32>
    %51 = vector.shape_cast %50 : vector<8x128xf32> to vector<1x8x128xf32>
    %cst_17 = arith.constant dense<0.000000e+00> : vector<1xf32>
    %52 = vector.multi_reduction <add>, %51, %cst_17 [1, 2] : vector<1x8x128xf32> to vector<1xf32>
    %53 = vector.shape_cast %52 : vector<1xf32> to vector<1x1x1xf32>
    %54 = vector.extract %53[0, 0, 0] : f32 from vector<1x1x1xf32>
    %55 = vector.broadcast %54 : f32 to vector<1x1xf32>
    %56 = arith.addf %49, %55 : vector<1x1xf32>
    %c0_18 = arith.constant 0 : index
    %c0_19 = arith.constant 0 : index
    %57 = vector.load %arg6[%c0_18, %c0_19] : memref<1x1xf32, #tpu.memory_space<vmem>>, vector<1x1xf32>
    tpu.vector_store %arg6[%c0_18, %c0_19], %56 {strides = array<i32>} : memref<1x1xf32, #tpu.memory_space<vmem>>, vector<1x1xf32>,
    %c0_i32_20 = arith.constant 0 : i32
    %58 = arith.cmpi eq, %arg0, %c0_i32_20 : i32
    %59 = arith.extui %58 : i1 to i32
    %c0_i32_21 = arith.constant 0 : i32
    %60 = arith.cmpi ne, %59, %c0_i32_21 : i32
    scf.if %60 {
      %c0_22 = arith.constant 0 : index
      %c0_23 = arith.constant 0 : index
      %61 = vector.load %arg5[%c0_22, %c0_23] : memref<1x1xf32, #tpu.memory_space<vmem>>, vector<1x1xf32>
      %cst_24 = arith.constant 0.000000e+00 : f32
      %62 = vector.broadcast %cst_24 : f32 to vector<1x1xf32>
      %63 = arith.subf %62, %61 : vector<1x1xf32>
      %cst_25 = arith.constant 6.250000e-02 : f32
      %64 = vector.broadcast %cst_25 : f32 to vector<1x1xf32>
      %65 = arith.mulf %63, %64 : vector<1x1xf32>
      %cst_26 = arith.constant 1.000000e-01 : f32
      %66 = vector.broadcast %cst_26 : f32 to vector<1x1xf32>
      %67 = arith.subf %65, %66 : vector<1x1xf32>
      %68 = math.absf %67 : vector<1x1xf32>
      %cst_27 = arith.constant 1.000000e-01 : f32
      %69 = vector.broadcast %cst_27 : f32 to vector<1x1xf32>
      %70 = arith.addf %68, %69 : vector<1x1xf32>
      %c0_28 = arith.constant 0 : index
      %c0_29 = arith.constant 0 : index
      %71 = vector.load %arg6[%c0_28, %c0_29] : memref<1x1xf32, #tpu.memory_space<vmem>>, vector<1x1xf32>
      %cst_30 = arith.constant 0.000000e+00 : f32
      %72 = vector.broadcast %cst_30 : f32 to vector<1x1xf32>
      %73 = arith.subf %72, %71 : vector<1x1xf32>
      %cst_31 = arith.constant 6.250000e-02 : f32
      %74 = vector.broadcast %cst_31 : f32 to vector<1x1xf32>
      %75 = arith.mulf %73, %74 : vector<1x1xf32>
      %c0_32 = arith.constant 0 : index
      %c0_33 = arith.constant 0 : index
      %76 = vector.load %arg4[%c0_32, %c0_33] : memref<8x1xf32, #tpu.memory_space<vmem>>, vector<8x1xf32>
      %cst_34 = arith.constant 6.250000e-02 : f32
      %77 = vector.broadcast %cst_34 : f32 to vector<8x1xf32>
      %78 = arith.mulf %76, %77 : vector<8x1xf32>
      %cst_35 = arith.constant 9.99999996E-13 : f32
      %79 = vector.broadcast %cst_35 : f32 to vector<8x1xf32>
      %80 = arith.addf %78, %79 : vector<8x1xf32>
      %81 = math.log %80 : vector<8x1xf32>
      %cst_36 = arith.constant 2.000000e+00 : f32
      %82 = math.log %cst_36 : f32
      %83 = vector.broadcast %82 : f32 to vector<8x1xf32>
      %84 = arith.divf %81, %83 : vector<8x1xf32>
      %85 = arith.mulf %78, %84 : vector<8x1xf32>
      %cst_37 = arith.constant dense<0.000000e+00> : vector<1xf32>
      %86 = vector.multi_reduction <add>, %85, %cst_37 [0] : vector<8x1xf32> to vector<1xf32>
      %87 = vector.shape_cast %86 : vector<1xf32> to vector<1x1xf32>
      %cst_38 = arith.constant 0.000000e+00 : f32
      %88 = vector.broadcast %cst_38 : f32 to vector<1x1xf32>
      %89 = arith.subf %88, %87 : vector<1x1xf32>
      %90 = arith.addf %70, %89 : vector<1x1xf32>
      %91 = arith.subf %90, %75 : vector<1x1xf32>
      %c0_39 = arith.constant 0 : index
      %c0_40 = arith.constant 0 : index
      %92 = vector.load %arg3[%c0_39, %c0_40] : memref<1x1xf32, #tpu.memory_space<vmem>>, vector<1x1xf32>
      tpu.vector_store %arg3[%c0_39, %c0_40], %91 {strides = array<i32>} : memref<1x1xf32, #tpu.memory_space<vmem>>, vector<1x1xf32>,
    } else {
    }
    return
  }
  func.func @transform_0(%arg0: i32) -> (i32, i32) {
    %c0_i32 = arith.constant 0 : i32
    %c0_i32_0 = arith.constant 0 : i32
    return %c0_i32, %arg0 : i32, i32
  }
  func.func @transform_1(%arg0: i32) -> (i32, i32) {
    %c0_i32 = arith.constant 0 : i32
    %c0_i32_0 = arith.constant 0 : i32
    return %c0_i32, %arg0 : i32, i32
  }
  func.func @transform_2(%arg0: i32) -> (i32, i32) {
    %c0_i32 = arith.constant 0 : i32
    %c0_i32_0 = arith.constant 0 : i32
    %c0_i32_1 = arith.constant 0 : i32
    return %c0_i32, %c0_i32_0 : i32, i32
  }
}

</mosaic_0001>

<bundles_post_ra>
// kernel: tpu_custom_call.1
= control target key start
LH: loop header
LB: loop body
LE: loop exit
PB: predicated region body
PF: predicated region fallthrough
CT: control target
= control target key end

     0   :  { %7 = vsyncpa [#allocation6], 0  ;;  %s275_s0 = inlined_call_operand.hbm [shape: f32[8,128], index: 0, kind: input, shape index: {}]   ;;  %s276_s1 = inlined_call_operand.vmem [shape: s32[1,128], index: 1, kind: input, shape index: {}]   ;;  %s277_s2 = inlined_call_operand.hbm [shape: f32[1,1], index: 2, kind: output, shape index: {}]  }
   0x1   :  { %8 = vsyncpa [#allocation7], 0  ;;  %s222_s9 = smov [#allocation5]   ;;  %s174_s13 = scalar_lea.hbm %s275_s0, 128 }
   0x2   :  { %s15_s10 = sshll.u32 %s222_s9, 4  ;;  %p175_p0 = scmp.ne.s32.totalorder %s275_s0, %s174_s13  ;;  %s16_s10 = int_to_ptr.vmem [resolvable:$true] %s15_s10 }
   0x3   :  { %p178_p1 = scmp.lt.u32.totalorder %s174_s13, %s275_s0 }
   0x5   :  { %p180_p2 = pnand %p178_p1, %p175_p0 }
   0x7   :  { %183 = shalt.err (!%p180_p2)
}
   0x8   :  { %s184_s18 = scalar_lea.vmem %s16_s10, 128  ;;  %p189_p4 = scmp.lt.s32.totalorder %s16_s10, %s16_s10 }
   0x9   :  { %p185_p3 = scmp.ne.s32.totalorder %s16_s10, %s184_s18  ;;  %p190_p5 = scmp.lt.s32.totalorder %s184_s18, %s184_s18 }
   0xb   :  { %p191_p6 = por %p190_p5, %p189_p4 }
   0xd   :  { %p192_p7 = pnand %p191_p6, %p185_p3 }
   0xf   :  { %195 = shalt.err (!%p192_p7)
}
  0x10   :  { %18 = dma.hbm_to_vmem [thread:$0]  %s275_s0, 128, %s16_s10, [#allocation6]  }
  0x11   :  { %218 = dma.done.wait [#allocation6], 128  }
  0x12   :  { %219 = vsyncadd [#allocation6], 4294967168  ;;  %v33_v0 = vld [vmem:[#allocation5] sm:$0xff]  ;;  %v35_v15 = vlaneseq  ;;  %v156_v19 = vld [vmem:[%s276_s1] ss:$0 sm:$0xff]  ;;  %v223_v20 = vmov 0.0  }
  0x13   :  { %v43_v1 = vrot.slane %v33_v0, 4  ;;  %vm28_vm2 = vcmask 7168   ;;  %vm30_vm3 = vcmask 0   ;;  %s224_s23 = smov [#allocation8]  }
  0x14   :  { %v36_v17 = vand.u32 127, %v35_v15  ;;  %v64_v18 = vshrl.u32 %v35_v15, 7  ;;  %29 = vst.msk [vmem:[#allocation2] sm:$0xff] %vm28_vm2, %v223_v20  ;;  %s146_s24 = sshll.u32 %s224_s23, 4  ;;  %s147_s24 = int_to_ptr.vmem [resolvable:$true] %s146_s24 }
  0x15   :  { %v44_v2 = vmax.f32 %v33_v0, %v43_v1  ;;  %31 = vst.msk [vmem:[#allocation3] sm:$0x1] %vm30_vm3, %v223_v20  ;;  %32 = vst.msk [vmem:[#allocation4] sm:$0x1] %vm30_vm3, %v223_v20  ;;  %s196_s25 = scalar_lea.vmem %s147_s24, 16  ;;  %s200_s26 = scalar_lea.vmem %s147_s24, 32 }
  0x16   :  { %vm40_vm0 = vcmp.lt.s32.totalorder %v36_v17, 16  ;;  %vm69_vm1 = vcmp.eq.s32.totalorder %v64_v18, %v156_v19  ;;  %p197_p8 = scmp.ne.s32.totalorder %s147_s24, %s196_s25  ;;  %p201_p9 = scmp.lt.s32.totalorder %s147_s24, %s147_s24 }
  0x17   :  { %v45_v3 = vrot.slane %v44_v2, 2  ;;  %v155_v21 = vsel %vm40_vm0, 1.0, %v223_v20  ;;  %v157_v22 = vsel %vm69_vm1, 1.0, %v223_v20  ;;  %p202_p10 = scmp.lt.s32.totalorder %s200_s26, %s196_s25 }
  0x18   :  { %v72_v26 = vmul.f32 %v157_v22, %v155_v21 }
  0x19   :  { %v46_v4 = vmax.f32 %v44_v2, %v45_v3  ;;  %p203_p11 = por %p202_p10, %p201_p9 }
  0x1b   :  { %v47_v5 = vrot.slane %v46_v4, 1  ;;  %v74_v32 = vld [vmem:[#allocation2] sm:$0xff]  ;;  %p204_p12 = pnand %p203_p11, %p197_p8 }
  0x1c   :  { %v80_v58 = vld [vmem:[#allocation3] sm:$0x1]  ;;  %v95_v62 = vld [vmem:[#allocation4] sm:$0x1] }
  0x1d   :  { %v48_v6 = vmax.f32 %v46_v4, %v47_v5 }
  0x1f   :  { %v49_v7 = vsub.f32 %v33_v0, %v48_v6 }
  0x21   :  { %v50_v8 = vmul.f32 1.442695, %v49_v7 }
  0x23   :  { %166 = vpow2.f32 %v50_v8 }
  0x2d   :  { %v167_v9 = vpop.eup %166 }
  0x2e   :  { %v52_v10 = vrot.slane %v167_v9, 4 }
  0x30   :  { %v53_v11 = vadd.f32 %v167_v9, %v52_v10 }
  0x32   :  { %v54_v12 = vrot.slane %v53_v11, 2 }
  0x34   :  { %v55_v13 = vadd.f32 %v54_v12, %v53_v11 }
  0x36   :  { %v56_v14 = vrot.slane %v55_v13, 1 }
  0x38   :  { %v57_v16 = vadd.f32 %v56_v14, %v55_v13 }
  0x3a   :  { %168 = vlog2.f32 %v57_v16 }
  0x3b   :  { %170 = vrcp.f32 %v57_v16 }
  0x44   :  { %v169_v23 = vpop.eup %168 }
  0x45   :  { %v171_v24 = vpop.eup %170  ;;  %v59_v25 = vmul.f32 0.6931472, %v169_v23 }
  0x46   :  { %v61_v27 = vmul.f32 %v171_v24, %v167_v9 }
  0x47   :  { %v62_v28 = vsub.f32 %v49_v7, %v59_v25 }
  0x48   :  { %v73_v29 = vmul.f32 %v155_v21, %v61_v27 }
  0x49   :  { %v81_v30 = vmul.f32 %v72_v26, %v62_v28 }
  0x4a   :  { %75 = vadd.xlane.f32.xlu1 %v73_v29  ;;  %v96_v31 = vmul.f32 %v73_v29, %v62_v28 }
  0x4b   :  { %82 = vadd.xlane.f32.xlu0 %v81_v30 }
  0x4f   :  { %97 = vadd.xlane.f32.xlu0 %v96_v31 }
  0xd7   :  { %v76_v33 = vpop.xlane.xlu1 %75 }
  0xd8   :  { %v83_v34 = vpop.xlane.xlu0 %82  ;;  %v77_v35 = vadd.f32 %v76_v33, %v74_v32 }
  0xd9   :  { %v84_v36 = vrot.slane %v83_v34, 4 }
  0xda   :  { %79 = vst.msk [vmem:[#allocation2] sm:$0xff] %vm28_vm2, %v77_v35 }
  0xdb   :  { %v85_v37 = vadd.f32 %v84_v36, %v83_v34 }
  0xdc   :  { %v98_v38 = vpop.xlane.xlu0 %97 }
  0xdd   :  { %v86_v39 = vrot.slane %v85_v37, 2  ;;  %v99_v40 = vrot.slane %v98_v38, 4 }
  0xdf   :  { %v100_v41 = vadd.f32 %v99_v40, %v98_v38  ;;  %v87_v42 = vadd.f32 %v86_v39, %v85_v37 }
  0xe1   :  { %v101_v43 = vrot.slane %v100_v41, 2  ;;  %v88_v44 = vrot.slane %v87_v42, 1  ;;  %v121_v49 = vld [vmem:[#allocation2] sm:$0xff] }
  0xe2   :  { %v122_v50 = vmul.f32 0.0625, %v121_v49 }
  0xe3   :  { %v102_v45 = vadd.f32 %v101_v43, %v100_v41  ;;  %v89_v46 = vadd.f32 %v88_v44, %v87_v42 }
  0xe4   :  { %v123_v51 = vadd.f32 1e-12, %v122_v50 }
  0xe5   :  { %159 = vpush %v89_v46  ;;  %v103_v47 = vrot.slane %v102_v45, 1 }
  0xe6   :  { %172 = vlog2.f32 %v123_v51 }
  0xe7   :  { %v104_v48 = vadd.f32 %v103_v47, %v102_v45 }
  0xe9   :  { %161 = vpush %v104_v48 }
  0xf0   :  { %v173_v52 = vpop.eup %172 }
  0xf1   :  { %v125_v53 = vmul.f32 0.6931472, %v173_v52 }
  0xf3   :  { %v127_v54 = vmul.f32 1.442695, %v125_v53 }
  0xf5   :  { %v128_v55 = vmul.f32 %v127_v54, %v122_v50 }
  0xf7   :  { %v129_v56 = vsel %vm28_vm2, %v128_v55, 0.0 }
  0xf8   :  { %v130_v57 = vrot.slane %v129_v56, 4 }
  0xfa   :  { %v131_v59 = vadd.f32 %v130_v57, %v129_v56 }
  0xfc   :  { %v132_v63 = vrot.slane %v131_v59, 2 }
  0xfe   :  { %v133_v2 = vadd.f32 %v132_v63, %v131_v59 }
 0x100   :  { %v134_v5 = vrot.slane %v133_v2, 1 }
 0x102   :  { %v135_v9 = vadd.f32 %v134_v5, %v133_v2 }
 0x104   :  { %v136_v13 = vsub.f32 0.0, %v135_v9 }
 0x116   :  { %s160_s1 = spop %159 }
 0x117   :  { %v91_v60 = vstv %s160_s1 }
 0x118   :  { %v92_v61 = vadd.f32 %v91_v60, %v80_v58 }
 0x11a   :  { %94 = vst.msk [vmem:[#allocation3] sm:$0x1] %vm30_vm3, %v92_v61  ;;  %s162_s22 = spop %161 }
 0x11b   :  { %v106_v0 = vstv %s162_s22 }
 0x11c   :  { %v107_v1 = vadd.f32 %v106_v0, %v95_v62 }
 0x11e   :  { %108 = vst.msk [vmem:[#allocation4] sm:$0x1] %vm30_vm3, %v107_v1 }
 0x121   :  { %v112_v3 = vld [vmem:[#allocation3] sm:$0x1] }
 0x122   :  { %v113_v4 = vsub.f32 0.0, %v112_v3 }
 0x124   :  { %v114_v6 = vmul.f32 0.0625, %v113_v4 }
 0x125   :  { %v118_v7 = vld [vmem:[#allocation4] sm:$0x1] }
 0x126   :  { %v158_v8 = vadd.f32 -0.1, %v114_v6  ;;  %v119_v11 = vsub.f32 0.0, %v118_v7 }
 0x128   :  { %v116_v10 = vand.u32 2147483647, %v158_v8  ;;  %v120_v14 = vmul.f32 0.0625, %v119_v11 }
 0x12a   :  { %v117_v12 = vadd.f32 0.1, %v116_v10 }
 0x12c   :  { %v137_v15 = vadd.f32 %v136_v13, %v117_v12 }
 0x12e   :  { %v138_v16 = vsub.f32 %v137_v15, %v120_v14 }
 0x130   :  { %139 = vst.msk [vmem:[#allocation8] sm:$0x1] %vm30_vm3, %v138_v16 }
 0x131   :  { %207 = shalt.err (!%p204_p12)
}
 0x132   :  { %s208_s29 = scalar_lea.hbm %s277_s2, 16 }
 0x133   :  { %p209_p13 = scmp.ne.s32.totalorder %s277_s2, %s208_s29  ;;  %p212_p0 = scmp.lt.u32.totalorder %s208_s29, %s277_s2 }
 0x135   :  { %p214_p1 = pnand %p212_p0, %p209_p13 }
 0x137   :  { %217 = shalt.err (!%p214_p1)
}
 0x138   :  { %149 = dma.vmem_to_hbm [thread:$0]  %s147_s24, 16, %s277_s2, [#allocation7]  }
 0x139   :  { %220 = dma.done.wait [#allocation7], 16  }
 0x13a   :  { %221 = vsyncadd [#allocation7], 4294967280 }
 0x13b   :  { %153 = vsyncpa [#allocation6], 1 }
 0x13c   :  { %154 = vsyncpa [#allocation7], 1 }

</bundles_post_ra>
